<compile_context>
chip_gen: v5e
topology: v5e:2x2
jax: 0.10.0
libtpu: 0.0.40
codegen_flags: <defaults>
</compile_context>

<pallas_src>
import jax
import jax.numpy as jnp
from jax.experimental import pallas as pl
from jax.experimental.pallas import tpu as pltpu


_LANE_UNROLL_CAP = 256           # max 128-lane chunks unrolled per reduction
_MiB = 1024 * 1024


def _vmem_capacity_bytes():
    """Physical VMEM per core; conservative (v7x, 64 MiB) default if unknown."""
    try:
        info = pltpu.get_tpu_info()
        cap = int(getattr(info, "vmem_capacity_bytes", 0) or 0)
        if cap > 0:
            return cap
    except Exception:
        pass
    return 64 * _MiB


def _budgets():
    """(target_block_bytes, vmem_limit_bytes), generation-gated.

    v5e/v6e (128 MiB VMEM): 8 MiB blocks, 64 MiB scoped limit.
    v7x     ( 64 MiB VMEM): 4 MiB blocks, 32 MiB scoped limit.
    In + out double-buffered x blocks stay comfortably under the limit.
    """
    if _vmem_capacity_bytes() >= 96 * _MiB:
        return 8 * _MiB, 64 * _MiB
    return 4 * _MiB, 32 * _MiB


def _round_up(v, m):
    return ((v + m - 1) // m) * m


def _sublane_multiple(dtype):
    """Dtype-aware sublane tile: 8 (f32), 16 (bf16), 32 (int8/fp8)."""
    return max(8, 32 // jnp.dtype(dtype).itemsize)


def _choose_tiles(rows, hw, dtype, target_bytes):
    """Pick (row_tile, lane_tile) for a (rows, hw) slab of `dtype`."""
    elem = jnp.dtype(dtype).itemsize
    sub = _sublane_multiple(dtype)

    # Lane (spatial) tile: full extent when it fits, else a 128-multiple that
    # divides hw exactly (no masked lanes), else a capped tile + masked tail
    # (never an unbounded full-hw block that could blow the VMEM limit).
    lane_cap = max(128, (target_bytes // (sub * elem)) // 128 * 128)
    lane_cap = min(lane_cap, 128 * _LANE_UNROLL_CAP)
    if hw <= lane_cap:
        lt = hw
    else:
        lt = 0
        t = lane_cap
        while t >= 128:
            if hw % t == 0:
                lt = t
                break
            t -= 128
        if lt == 0:
            lt = lane_cap                      # odd hw: masked tail tile

    # Row (sublane) tile: dtype-aware multiple sized to the byte target, but
    # keep >= 2 row tiles when possible so the 'parallel' grid axis can be
    # sharded across v7x's two TensorCores.
    if rows <= sub:
        rt = rows
    else:
        rt = max(sub, (target_bytes // (lt * elem)) // sub * sub)
        if rows >= 2 * sub:
            rt = min(rt, _round_up((rows + 1) // 2, sub))
        rt = min(rt, _round_up(rows, sub))
    return rt, lt


def _lane_sum_f32(xv, max_unroll=_LANE_UNROLL_CAP):
    """Sum over the last (lane) axis -> (..., 1), bulk of the work on the VPU.

    128-lane chunks are combined with plain VPU adds (cheap vreg selects) and
    only one 128->1 cross-lane (XLU) reduce remains, keeping reduction work
    off the XLU slot so the kernel stays DMA-bound even at v7x bandwidth.
    """
    width = xv.shape[-1]
    n = width // 128
    if width % 128 == 0 and 1 < n <= max_unroll:
        part = xv[..., 0:128]
        for c in range(1, n):
            part = part + xv[..., c * 128:(c + 1) * 128]
        return jnp.sum(part, axis=-1, keepdims=True)
    return jnp.sum(xv, axis=-1, keepdims=True)


# --------------------------- fused single-pass kernel ------------------------

def _fused_kernel(x_ref, w1_ref, b1_ref, w2_ref, b2_ref, o_ref):
    """Pool + excitation MLP + scale for one sample in a single HBM pass."""
    xv = x_ref[0].astype(jnp.float32)                       # (C, HW)
    s = _lane_sum_f32(xv)                                   # (C, 1) spatial sums
    # 1/HW is folded into w1, so the raw sums feed the MLP directly.  The tiny
    # MLP runs at lane width 128 (replicated columns) so the MXU sees regular,
    # unmasked tiles instead of degenerate N=1 matvecs; column 0 is kept.
    s_b = jnp.broadcast_to(s, (s.shape[0], 128))            # (C, 128)
    h = jnp.maximum(
        jnp.dot(w1_ref[...], s_b, preferred_element_type=jnp.float32)
        + b1_ref[...], 0.0)                                 # (Ch, 128)
    g = jax.nn.sigmoid(
        jnp.dot(w2_ref[...], h, preferred_element_type=jnp.float32)
        + b2_ref[...])[:, 0:1]                              # (C, 1)
    o_ref[0] = x_ref[0] * g.astype(o_ref.dtype)


# ----------------------------- split fallback kernels ------------------------

def _make_pool_kernel(rt, lt, hw, n_lane_tiles):
    """Spatial sum-pool.  Grid = (row_tiles, lane_tiles); axis 1 reduces."""
    if n_lane_tiles == 1:
        # Single lane tile covers the whole spatial extent: direct reduce.
        def kernel(x_ref, s_ref):
            s_ref[...] = _lane_sum_f32(x_ref[...].astype(jnp.float32))
        return kernel, False

    assert lt % 128 == 0
    masked = (hw % lt != 0)
    n_chunks = lt // 128

    # Partial sums accumulate in an (rt, 128) f32 scratch via VPU adds; the
    # single 128->1 cross-lane (XLU) reduce runs once per row tile.
    def kernel(x_ref, s_ref, acc_ref):
        j = pl.program_id(1)

        @pl.when(j == 0)
        def _():
            acc_ref[...] = jnp.zeros_like(acc_ref)

        xv = x_ref[...].astype(jnp.float32)
        if masked:  # tail tile of a spatial size the lane tile doesn't divide
            lane = jax.lax.broadcasted_iota(jnp.int32, (rt, lt), 1) + j * lt
            xv = jnp.where(lane < hw, xv, 0.0)
        part = xv[:, 0:128]
        for c in range(1, n_chunks):
            part = part + xv[:, c * 128:(c + 1) * 128]
        acc_ref[...] += part

        @pl.when(j == pl.num_programs(1) - 1)
        def _():
            s_ref[...] = jnp.sum(acc_ref[...], axis=-1, keepdims=True)

    return kernel, True


def _scale_kernel(x_ref, g_ref, o_ref):
    """out = x * gate (per-row gate broadcast over the lane/spatial axis)."""
    o_ref[...] = x_ref[...] * g_ref[...]


# ----------------------------------- wrapper ---------------------------------

def cse_forward(x, w1, b1, w2, b2, *, mode="auto", block_bytes=None):
    """cSE forward.  x: (B, C, H, W); weights in PyTorch nn.Linear layout.

    mode: "auto" (default), "fused" (force single-pass kernel) or "split"
          (force pool-kernel -> JAX MLP -> scale-kernel fallback).
    block_bytes: optional tile-size override for the split path (test/tuning).
    """
    B, C, H, W = x.shape
    HW = H * W
    rows = B * C
    Ch = w1.shape[0]
    elem = jnp.dtype(x.dtype).itemsize
    target_block, vmem_limit = _budgets()
    if block_bytes is not None:
        target_block = block_bytes

    f32 = jnp.float32
    # Fold the 1/HW mean normalization into the first linear layer.
    w1s = w1.astype(f32) * (1.0 / HW)
    w2f = w2.astype(f32)
    b1c = b1.astype(f32).reshape(Ch, 1)
    b2c = b2.astype(f32).reshape(C, 1)

    # Fused path whenever a per-sample slab fits VMEM (double-buffered in+out)
    # and the per-sample grid step isn't dominated by fixed step overhead
    # (tiny slabs with a very large batch are better served by the split path).
    slab_bytes = C * HW * elem
    fits = 4 * slab_bytes + 2 * _MiB <= vmem_limit
    if mode == "auto":
        use_fused = fits and (slab_bytes >= 2 * _MiB or B <= 32)
    else:
        use_fused = (mode == "fused")

    if use_fused:
        # TODO(synk): with B == 1 this grid has a single block, so one v7x
        # TensorCore idles; splitting further would break the per-sample MLP.
        x3 = x.reshape(B, C, HW)
        out3 = pl.pallas_call(
            _fused_kernel,
            out_shape=jax.ShapeDtypeStruct((B, C, HW), x.dtype),
            grid_spec=pltpu.PrefetchScalarGridSpec(
                num_scalar_prefetch=0,
                grid=(B,),
                in_specs=[
                    pl.BlockSpec((1, C, HW), lambda b: (b, 0, 0)),
                    pl.BlockSpec((Ch, C), lambda b: (0, 0)),
                    pl.BlockSpec((Ch, 1), lambda b: (0, 0)),
                    pl.BlockSpec((C, Ch), lambda b: (0, 0)),
                    pl.BlockSpec((C, 1), lambda b: (0, 0)),
                ],
                out_specs=pl.BlockSpec((1, C, HW), lambda b: (b, 0, 0)),
            ),
            compiler_params=pltpu.CompilerParams(
                dimension_semantics=("parallel",),
                vmem_limit_bytes=vmem_limit),
        )(x3, w1s, b1c, w2f, b2c)
        return out3.reshape(B, C, H, W)

    # ------- split fallback: pool kernel -> tiny JAX MLP -> scale kernel ----
    x2 = x.reshape(rows, HW)                       # free reshape (no transpose)
    rt, lt = _choose_tiles(rows, HW, x.dtype, target_block)
    n_r = pl.cdiv(rows, rt)
    n_c = pl.cdiv(HW, lt)

    pool_kernel, has_scratch = _make_pool_kernel(rt, lt, HW, n_c)
    scratch = [pltpu.VMEM((rt, 128), jnp.float32)] if has_scratch else []
    sums = pl.pallas_call(
        pool_kernel,
        out_shape=jax.ShapeDtypeStruct((rows, 1), jnp.float32),
        grid_spec=pltpu.PrefetchScalarGridSpec(
            num_scalar_prefetch=0,
            grid=(n_r, n_c),
            in_specs=[pl.BlockSpec((rt, lt), lambda i, j: (i, j))],
            out_specs=pl.BlockSpec((rt, 1), lambda i, j: (i, 0)),
            scratch_shapes=scratch),
        compiler_params=pltpu.CompilerParams(
            dimension_semantics=("parallel", "arbitrary"),
            vmem_limit_bytes=vmem_limit),
    )(x2)

    # Tiny excitation MLP ((B, C)-sized) in plain JAX between the two kernels;
    # 1/HW is already folded into w1s so the sums feed it directly.
    s = sums.reshape(B, C)
    h = jax.nn.relu(jnp.dot(s, w1s.T, precision=jax.lax.Precision.HIGHEST)
                    + b1.astype(f32))
    g = jax.nn.sigmoid(jnp.dot(h, w2f.T, precision=jax.lax.Precision.HIGHEST)
                       + b2.astype(f32))
    gates = g.astype(x.dtype).reshape(rows, 1)

    out2 = pl.pallas_call(
        _scale_kernel,
        out_shape=jax.ShapeDtypeStruct((rows, HW), x.dtype),
        grid_spec=pltpu.PrefetchScalarGridSpec(
            num_scalar_prefetch=0,
            grid=(n_r, n_c),
            in_specs=[
                pl.BlockSpec((rt, lt), lambda i, j: (i, j)),   # x tile
                pl.BlockSpec((rt, 1), lambda i, j: (i, 0)),    # per-row gates
            ],
            out_specs=pl.BlockSpec((rt, lt), lambda i, j: (i, j)),
        ),
        compiler_params=pltpu.CompilerParams(
            dimension_semantics=("parallel", "parallel"),
            vmem_limit_bytes=vmem_limit),
    )(x2, gates)
    return out2.reshape(B, C, H, W)


def cse_reference(x, w1, b1, w2, b2):
    """Pure-JAX reference mirroring the PyTorch forward."""
    s = x.reshape(*x.shape[:-2], -1).mean(-1)                      # (B, C)
    s = jax.nn.relu(
        jnp.dot(s, w1.T, precision=jax.lax.Precision.HIGHEST) + b1)
    s = jax.nn.sigmoid(
        jnp.dot(s, w2.T, precision=jax.lax.Precision.HIGHEST) + b2)
    return x * s[..., None, None]


if __name__ == "__main__":
    def _make_inputs(key, B, C, H, W, r):
        Ch = max(1, C // r)
        kx, k1, k2, k3, k4 = jax.random.split(key, 5)
        x = jax.random.normal(kx, (B, C, H, W), dtype=jnp.float32)
        w1 = jax.random.normal(k1, (Ch, C), dtype=jnp.float32) * 0.1
        b1 = jax.random.normal(k2, (Ch,), dtype=jnp.float32) * 0.1
        w2 = jax.random.normal(k3, (C, Ch), dtype=jnp.float32) * 0.1
        b2 = jax.random.normal(k4, (C,), dtype=jnp.float32) * 0.1
        return x, w1, b1, w2, b2

    def _check(args, mode, **kw):
        x, w1, b1, w2, b2 = args
        out = jax.block_until_ready(
            cse_forward(x, w1, b1, w2, b2, mode=mode, **kw))
        ref = cse_reference(x, w1, b1, w2, b2)
        assert out.shape == x.shape
        err = float(jnp.max(jnp.abs(out - ref)))
        # Tolerance budget covers MXU f32 matmul passes & reduction-order diffs.
        assert jnp.allclose(out, ref, atol=1e-4, rtol=1e-4), (mode, err)

    key = jax.random.PRNGKey(0)
    k_a, k_b, k_c = jax.random.split(key, 3)

    # Shapes consistent with the module: in_channels=32, r=16 -> hidden=2.
    args_a = _make_inputs(k_a, B=2, C=32, H=16, W=16, r=16)
    _check(args_a, "auto")     # auto -> fused single-pass path
    _check(args_a, "split")    # pool + MLP + scale fallback

    # Odd shapes: C not a sublane multiple, HW not a lane multiple, rows that
    # don't divide the row tile -> exercises full-extent blocks & masked tails.
    args_b = _make_inputs(k_b, B=3, C=24, H=10, W=10, r=8)
    _check(args_b, "fused")
    _check(args_b, "split")

    # Spatial size with no 128-multiple divisor + a tiny forced tile so the
    # split pool kernel's masked-tail / scratch-accumulator path is exercised.
    args_c = _make_inputs(k_c, B=3, C=24, H=15, W=20, r=8)
    _check(args_c, "split", block_bytes=8192)

    print("KERNEL_OK")
</pallas_src>

<mosaic_0001>
module attributes {stable_mosaic.version = 11 : i64} {
  func.func @_fused_kernel(%arg0: i32, %arg1: memref<1x32x256xf32, #tpu.memory_space<vmem>>, %arg2: memref<2x32xf32, #tpu.memory_space<vmem>>, %arg3: memref<2x1xf32, #tpu.memory_space<vmem>>, %arg4: memref<32x2xf32, #tpu.memory_space<vmem>>, %arg5: memref<32x1xf32, #tpu.memory_space<vmem>>, %arg6: memref<1x32x256xf32, #tpu.memory_space<vmem>>) attributes {dimension_semantics = [#tpu.dimension_semantics<parallel>], iteration_bounds = array<i64: 2>, scalar_prefetch = 0 : i64, scratch_operands = 0 : i64, tpu.core_type = #tpu.core_type<tc>, window_params = [{transform_indices = @transform_0, window_bounds = array<i64: 1, 32, 256>}, {pipeline_mode = #tpu.pipeline_mode<synchronous>, transform_indices = @transform_1, window_bounds = array<i64: 2, 32>}, {pipeline_mode = #tpu.pipeline_mode<synchronous>, transform_indices = @transform_2, window_bounds = array<i64: 2, 1>}, {pipeline_mode = #tpu.pipeline_mode<synchronous>, transform_indices = @transform_3, window_bounds = array<i64: 32, 2>}, {pipeline_mode = #tpu.pipeline_mode<synchronous>, transform_indices = @transform_4, window_bounds = array<i64: 32, 1>}, {transform_indices = @transform_5, window_bounds = array<i64: 1, 32, 256>}]} {
    %c0 = arith.constant 0 : index
    %c0_0 = arith.constant 0 : index
    %c0_1 = arith.constant 0 : index
    %0 = vector.load %arg1[%c0, %c0_0, %c0_1] : memref<1x32x256xf32, #tpu.memory_space<vmem>>, vector<1x32x256xf32>
    %1 = vector.shape_cast %0 : vector<1x32x256xf32> to vector<32x256xf32>
    %2 = vector.extract_strided_slice %1 {offsets = [0, 0], sizes = [32, 128], strides = [1, 1]} : vector<32x256xf32> to vector<32x128xf32>
    %3 = vector.extract_strided_slice %1 {offsets = [0, 128], sizes = [32, 128], strides = [1, 1]} : vector<32x256xf32> to vector<32x128xf32>
    %4 = arith.addf %2, %3 : vector<32x128xf32>
    %cst = arith.constant dense<0.000000e+00> : vector<32xf32>
    %5 = vector.multi_reduction <add>, %4, %cst [1] : vector<32x128xf32> to vector<32xf32>
    %6 = vector.shape_cast %5 : vector<32xf32> to vector<32x1xf32>
    %7 = vector.shape_cast %6 : vector<32x1xf32> to vector<32x1xf32>
    %8 = vector.broadcast %7 : vector<32x1xf32> to vector<32x128xf32>
    %c0_2 = arith.constant 0 : index
    %c0_3 = arith.constant 0 : index
    %9 = vector.load %arg2[%c0_2, %c0_3] : memref<2x32xf32, #tpu.memory_space<vmem>>, vector<2x32xf32>
    %cst_4 = arith.constant dense<0.000000e+00> : vector<2x128xf32>
    %10 = tpu.matmul %9, %8, %cst_4 {dimension_numbers = #tpu.dot_dimension_numbers<[1], [0], [0], [1], [0, 0, 1, 1], [], []>} : vector<2x32xf32>, vector<32x128xf32>, vector<2x128xf32> -> vector<2x128xf32>
    %c0_5 = arith.constant 0 : index
    %c0_6 = arith.constant 0 : index
    %11 = vector.load %arg3[%c0_5, %c0_6] : memref<2x1xf32, #tpu.memory_space<vmem>>, vector<2x1xf32>
    %12 = vector.broadcast %11 : vector<2x1xf32> to vector<2x128xf32>
    %13 = arith.addf %10, %12 : vector<2x128xf32>
    %cst_7 = arith.constant 0.000000e+00 : f32
    %14 = vector.broadcast %cst_7 : f32 to vector<2x128xf32>
    %15 = arith.maximumf %13, %14 : vector<2x128xf32>
    %c0_8 = arith.constant 0 : index
    %c0_9 = arith.constant 0 : index
    %16 = vector.load %arg4[%c0_8, %c0_9] : memref<32x2xf32, #tpu.memory_space<vmem>>, vector<32x2xf32>
    %cst_10 = arith.constant dense<0.000000e+00> : vector<32x128xf32>
    %17 = tpu.matmul %16, %15, %cst_10 {dimension_numbers = #tpu.dot_dimension_numbers<[1], [0], [0], [1], [0, 0, 1, 1], [], []>} : vector<32x2xf32>, vector<2x128xf32>, vector<32x128xf32> -> vector<32x128xf32>
    %c0_11 = arith.constant 0 : index
    %c0_12 = arith.constant 0 : index
    %18 = vector.load %arg5[%c0_11, %c0_12] : memref<32x1xf32, #tpu.memory_space<vmem>>, vector<32x1xf32>
    %19 = vector.broadcast %18 : vector<32x1xf32> to vector<32x128xf32>
    %20 = arith.addf %17, %19 : vector<32x128xf32>
    %21 = arith.negf %20 : vector<32x128xf32>
    %22 = math.exp %21 : vector<32x128xf32>
    %cst_13 = arith.constant 1.000000e+00 : f32
    %23 = vector.broadcast %cst_13 : f32 to vector<32x128xf32>
    %24 = arith.addf %23, %22 : vector<32x128xf32>
    %25 = arith.divf %23, %24 : vector<32x128xf32>
    %26 = vector.extract_strided_slice %25 {offsets = [0, 0], sizes = [32, 1], strides = [1, 1]} : vector<32x128xf32> to vector<32x1xf32>
    %c0_14 = arith.constant 0 : index
    %c0_15 = arith.constant 0 : index
    %c0_16 = arith.constant 0 : index
    %27 = vector.load %arg1[%c0_14, %c0_15, %c0_16] : memref<1x32x256xf32, #tpu.memory_space<vmem>>, vector<1x32x256xf32>
    %28 = vector.shape_cast %27 : vector<1x32x256xf32> to vector<32x256xf32>
    %29 = vector.broadcast %26 : vector<32x1xf32> to vector<32x256xf32>
    %30 = arith.mulf %28, %29 : vector<32x256xf32>
    %c0_17 = arith.constant 0 : index
    %c0_18 = arith.constant 0 : index
    %c0_19 = arith.constant 0 : index
    %31 = vector.load %arg6[%c0_17, %c0_18, %c0_19] : memref<1x32x256xf32, #tpu.memory_space<vmem>>, vector<1x32x256xf32>
    %32 = vector.shape_cast %31 : vector<1x32x256xf32> to vector<32x256xf32>
    %33 = vector.shape_cast %30 : vector<32x256xf32> to vector<1x32x256xf32>
    tpu.vector_store %arg6[%c0_17, %c0_18, %c0_19], %33 {strides = array<i32>} : memref<1x32x256xf32, #tpu.memory_space<vmem>>, vector<1x32x256xf32>,
    return
  }
  func.func @transform_0(%arg0: i32) -> (i32, i32, i32) {
    %c0_i32 = arith.constant 0 : i32
    %c0_i32_0 = arith.constant 0 : i32
    %c0_i32_1 = arith.constant 0 : i32
    return %arg0, %c0_i32, %c0_i32_0 : i32, i32, i32
  }
  func.func @transform_1(%arg0: i32) -> (i32, i32) {
    %c0_i32 = arith.constant 0 : i32
    %c0_i32_0 = arith.constant 0 : i32
    %c0_i32_1 = arith.constant 0 : i32
    return %c0_i32, %c0_i32_0 : i32, i32
  }
  func.func @transform_2(%arg0: i32) -> (i32, i32) {
    %c0_i32 = arith.constant 0 : i32
    %c0_i32_0 = arith.constant 0 : i32
    %c0_i32_1 = arith.constant 0 : i32
    return %c0_i32, %c0_i32_0 : i32, i32
  }
  func.func @transform_3(%arg0: i32) -> (i32, i32) {
    %c0_i32 = arith.constant 0 : i32
    %c0_i32_0 = arith.constant 0 : i32
    %c0_i32_1 = arith.constant 0 : i32
    return %c0_i32, %c0_i32_0 : i32, i32
  }
  func.func @transform_4(%arg0: i32) -> (i32, i32) {
    %c0_i32 = arith.constant 0 : i32
    %c0_i32_0 = arith.constant 0 : i32
    %c0_i32_1 = arith.constant 0 : i32
    return %c0_i32, %c0_i32_0 : i32, i32
  }
  func.func @transform_5(%arg0: i32) -> (i32, i32, i32) {
    %c0_i32 = arith.constant 0 : i32
    %c0_i32_0 = arith.constant 0 : i32
    %c0_i32_1 = arith.constant 0 : i32
    return %arg0, %c0_i32, %c0_i32_0 : i32, i32, i32
  }
}

</mosaic_0001>

<bundles_post_ra>
// kernel: tpu_custom_call.1
= control target key start
LH: loop header
LB: loop body
LE: loop exit
PB: predicated region body
PF: predicated region fallthrough
CT: control target
= control target key end

     0   :  { %10 = vsyncpa [#allocation3], 0  ;;  %s1002_s0 = inlined_call_operand.hbm [shape: f32[2,32,256], index: 0, kind: input, shape index: {}]   ;;  %s1003_s1 = inlined_call_operand.vmem [shape: f32[2,32], index: 1, kind: input, shape index: {}]   ;;  %s1004_s2 = inlined_call_operand.vmem [shape: f32[2,1], index: 2, kind: input, shape index: {}]   ;;  %s1005_s3 = inlined_call_operand.vmem [shape: f32[32,2], index: 3, kind: input, shape index: {}]   ;;  %s1006_s4 = inlined_call_operand.vmem [shape: f32[32,1], index: 4, kind: input, shape index: {}]   ;;  %s1007_s5 = inlined_call_operand.hbm [shape: f32[2,32,256], index: 5, kind: output, shape index: {}]  }
   0x1   :  { %12 = vsyncpa [#allocation3 + $0x1], 0 }
   0x2   :  { %13 = vsyncpa [#allocation4], 0 }
   0x3   :  { %15 = vsyncpa [#allocation4 + $0x1], 0  ;;  %s803_s18 = smov 0   ;;  %s805_s19 = smov 0  }
   0x4   :  { %s807_s20 = smov 0   ;;  %s809_s21 = smov 0  }
   0x5 LB: > { %s824_s22 = sadd.s32 4294967295, %s766_s21   ;;  %s572_s23 = sadd.s32 4294967294, %s766_s21   ;;  %s766_s21 = sphi %s809_s21, %s1019_s21   ;;  %s762_s20 = sphi %s807_s20, %s1018_s20   ;;  %s758_s19 = sphi %s805_s19, %s1017_s19   ;;  %s754_s18 = sphi %s803_s18, %s1016_s18  }
   0x6   : > { %s828_s24 = sadd.s32 1, %s766_s21   ;;  %s28_s25 = sadd.s32 1, %s762_s20 }
   0x7   : > { %s25_s26 = ssub.s32 %s766_s21, %s828_s24  ;;  %p35_p0 = scmp.ne.s32.totalorder %s762_s20, %s758_s19 }
   0x8   : > { %p26_p1 = scmp.eq.s32.totalorder %s25_s26, 0  ;;  %p36_p2 = scmp.eq.s32.totalorder %s766_s21, 0 }
   0x9   : > { %p41_p3 = scmp.ne.s32.totalorder %s758_s19, %s754_s18  ;;  %p42_p4 = scmp.eq.s32.totalorder %s824_s22, 0 }
   0xa   : > { %s840_s27 = scalar_select %p26_p1, %s762_s20, %s28_s25  }
   0xb   : > { %p842_p5 = por %p36_p2, %p35_p0  ;;  %p846_p6 = por %p42_p4, %p41_p3 }
   0xc   : > { %p149_p7 = scmp.eq.s32.totalorder %s824_s22, 1  ;;  %p155_p8 = scmp.eq.s32.totalorder %s572_s23, 1 }
   0xd   : > { %p612_p10 = scmp.lt.s32.totalorder %s766_s21, 2  ;;  %s187_s7 = sand.u32 1, %s762_s20  }
   0xe   : > { %p853_p11 = por %p149_p7, %p35_p0  ;;  %p857_p12 = por %p155_p8, %p41_p3 }
   0xf   : > { %s596_s8 = sshll.u32 %s766_s21, 6  ;;  %s575_s9 = sshll.u32 %s187_s7, 6 }
  0x10   : > { %s196_s12 = scalar_lea.hbm %s1002_s0, %s596_s8  ;;  %s191_s14 = scalar_lea.vmem [#allocation2], %s575_s9 }
  0x11   : > { %s197_s13 = sshll.u32 %s196_s12, 4  ;;  %s199_s15 = sshll.u32 %s191_s14, 4  ;;  %s198_s13 = int_to_ptr.hbm [resolvable:$true] %s197_s13  ;;  %s200_s15 = int_to_ptr.vmem [resolvable:$true] %s199_s15 }
  0x12   : > { %p868_p13 = pnand %p612_p10, %p842_p5  ;;  %p578_p0 = scmp.ge.s32.totalorder %s766_s21, 1 }
  0x13   : > { %p207_p1 = scmp.lt.s32.totalorder %s766_s21, 3  ;;  %s188_s17 = scalar_lea.sflag [#allocation3], %s187_s7 }
  0x14   : > { %s670_s23 = sshra.s32 %s198_s13, 4  ;;  %p674_p3 = pneg %p868_p13  ;;  %s671_s23 = int_to_ptr.hbm [resolvable:$true] %s670_s23 }
  0x15   : > { %s672_s25 = scalar_lea.hbm %s671_s23, 64  ;;  %s677_s28 = scalar_lea.hbm %s1002_s0, 128 }
  0x16   : > { %p673_p2 = scmp.ne.s32.totalorder %s671_s23, %s672_s25  ;;  %p678_p5 = scmp.lt.s32.totalorder %s671_s23, %s1002_s0 }
  0x17   : > { %p679_p8 = scmp.lt.s32.totalorder %s677_s28, %s672_s25 }
  0x18   : > { %p675_p4 = pnand %p674_p3, %p673_p2 }
  0x19   : > { %p680_p10 = por %p679_p8, %p678_p5 }
  0x1a   : > { %p676_p7 = pneg %p675_p4 }
  0x1c   : > { %p681_p9 = pnand %p680_p10, %p676_p7 }
  0x1e   : > { %684 = shalt.err (!%p681_p9)
}
  0x1f   : > { %s768_s7 = smov 256   ;;  %s769_s11 = smov 16  }
  0x20   : > { %607 = dma.hbm_to_vmem [thread:$0]  (!%p868_p13), %s198_s13, 1024, %s200_s15, %s188_s17, %s768_s7, %s768_s7, %s769_s11  }
  0x21   : > { %p208_p2 = pnand %p578_p0, %p207_p1 }
  0x22   : > { %s889_s12 = sand.u32 (!%p208_p2), 1, %s758_s19  }
  0x23   : > { %211 = sbr.rel (%p208_p2) target bundleno = 589 (0x24d), region = 40  ;;  %s579_s14 = sshll.u32 (!%p208_p2), %s889_s12, 6 }
  0x24   : > { %s214_s23 = scalar_lea.sflag (!%p208_p2), [#allocation3], %s889_s12  ;;  %s217_s25 = scalar_lea.vmem (!%p208_p2), [#allocation2], %s579_s14 }
  0x28   : > { %745 = dma.done.wait (%p846_p6), %s214_s23, 1024  }
  0x29   : > { %747 = vsyncadd (%p846_p6), %s214_s23, 4294966272  ;;  %v899_v0 = vld [vmem:[%s217_s25 + $0x30] sm:$0xff]  ;;  %v901_v1 = vld [vmem:[%s217_s25 + $0x38] sm:$0xff]  ;;  %v770_v13 = vmov 0   ;;  %vm272_vm0 = vcmask 261120   ;;  %vm338_vm1 = vcmask 1041408  }
  0x2a   : > { %v903_v2 = vld [vmem:[%s217_s25 + $0x10] sm:$0xff]  ;;  %v256_v3 = vadd.f32 %v901_v1, %v899_v0  ;;  %v907_v4 = vld [vmem:[%s217_s25 + $0x18] sm:$0xff]  ;;  %v911_v6 = vld [vmem:[%s217_s25 + $0x20] sm:$0xff]  ;;  %651 = vset.pattern.permute.xlu2 %v770_v13  ;;  %652 = vset.pattern.permute.xlu0 %v770_v13  ;;  %vm325_vm2 = vcmask 15360   ;;  %s244_s8 = scalar_lea.vmem [#allocation5], %s579_s14  ;;  %s597_s28 = sshll.u32 %s824_s22, 6 }
  0x2b   : > { %v254_v5 = vadd.f32 %v907_v4, %v903_v2  ;;  %v913_v7 = vld [vmem:[%s217_s25 + $0x28] sm:$0xff]  ;;  %v915_v8 = vld [vmem:[%s217_s25] sm:$0xff]  ;;  %653 = vset.pattern.permute.xlu1 %v770_v13  ;;  %v304_v15 = vld [vmem:[%s1006_s4 + $0x18] sm:$0xff]  ;;  %s495_s10 = scalar_lea.hbm %s1007_s5, %s597_s28  ;;  %s496_s7 = sshll.u32 %s244_s8, 4  ;;  %s497_s7 = int_to_ptr.vmem [resolvable:$true] %s496_s7 }
  0x2c   : > { %263 = vadd.xlane.f32.xlu0 %v256_v3  ;;  %v917_v9 = vld [vmem:[%s217_s25 + $0x8] sm:$0xff]  ;;  %v255_v10 = vadd.f32 %v913_v7, %v911_v6  ;;  %v266_v12 = vld [vmem:[%s1004_s2] sm:$0x3]  ;;  %v303_v22 = vld [vmem:[%s1006_s4 + $0x10] sm:$0xff]  ;;  %s498_s11 = sshll.u32 %s495_s10, 4  ;;  %s484_s23 = scalar_lea.sflag [#allocation4], %s889_s12  ;;  %s499_s11 = int_to_ptr.hbm [resolvable:$true] %s498_s11 }
  0x2d   : > { %259 = vadd.xlane.f32.xlu1 %v254_v5  ;;  %v253_v11 = vadd.f32 %v917_v9, %v915_v8  ;;  %269 = vperm.xlu2 %651, %v266_v12   ;;  %v301_v14 = vld [vmem:[%s1006_s4] sm:$0xff]  ;;  %v302_v21 = vld [vmem:[%s1006_s4 + $0x8] sm:$0xff]  ;;  %v300_v28 = vld [vmem:[%s1005_s3 + $0x18] sm:$0xff]  ;;  %s714_s25 = sshra.s32 %s499_s11, 4  ;;  %s720_s15 = scalar_lea.hbm %s1007_s5, 128  ;;  %s715_s25 = int_to_ptr.hbm [resolvable:$true] %s714_s25 }
  0x2e   : > { %v265_v20 = vld [vmem:[%s1003_s1] sm:$0x3]  ;;  %v298_v29 = vld [vmem:[%s1005_s3 + $0x8] sm:$0xff]  ;;  %v299_v30 = vld [vmem:[%s1005_s3 + $0x10] sm:$0xff]  ;;  %s716_s22 = scalar_lea.hbm %s715_s25, 64  ;;  %p721_p0 = scmp.lt.s32.totalorder %s715_s25, %s1007_s5 }
  0x2f   : > { %v297_v27 = vld [vmem:[%s1005_s3] sm:$0xff]  ;;  %p717_p6 = scmp.ne.s32.totalorder %s715_s25, %s716_s22  ;;  %p722_p1 = scmp.lt.s32.totalorder %s720_s15, %s716_s22 }
  0x31   : > { %p718_p9 = pnand %p717_p6, %p853_p11  ;;  %p723_p3 = por %p722_p1, %p721_p0 }
  0x33   : > { %p719_p13 = pneg %p718_p9 }
  0x34   : > { %261 = vadd.xlane.f32.xlu0 %v255_v10 }
  0x35   : > { %257 = vadd.xlane.f32.xlu1 %v253_v11  ;;  %307 = vperm.xlu2 %651, %v301_v14   ;;  %p724_p4 = pnand %p723_p3, %p719_p13 }
  0x3d   : > { %322 = vperm.xlu2 %651, %v304_v15  }
  0x48   : > { %312 = vperm.xlu0 %652, %v302_v21  }
  0x4e   : > { %317 = vperm.xlu1 %653, %v303_v22  }
  0x87   : > { %v270_v23 = vpop.permute.xlu2 %269 }
  0x8f   : > { %v308_v31 = vpop.permute.xlu2 %307 }
  0x97   : > { %v323_v36 = vpop.permute.xlu2 %322 }
  0x9f   : > { %v264_v16 = vpop.xlane.xlu0 %263 }
  0xa0   : > { %288 = vmatpush.msra.mxu0 %v264_v16  ;;  %v260_v17 = vpop.xlane.xlu1 %259 }
  0xa7   : > { %v262_v18 = vpop.xlane.xlu0 %261 }
  0xa8   : > { %289 = vmatpush.msra.mxu0 %v262_v18  ;;  %v258_v19 = vpop.xlane.xlu1 %257 }
  0xaa   : > { %290 = vmatpush.msra.mxu0 %v260_v17 }
  0xac   : > { %291 = vmatpush.msra.mxu0 %v258_v19 }
  0xad   : > { %581 = vmatmul.msk.f32.vlgmr.msra.gmra.mxu0 %vm272_vm0, %v265_v20 }
  0xba   : > { %v313_v35 = vpop.permute.xlu0 %312 }
  0xc0   : > { %v318_v45 = vpop.permute.xlu1 %317 }
 0x12a   : > { %v293_v24 = vpop.f32.mrf.mxu0 }
 0x12b   : > { %v294_v25 = vadd.f32 %v293_v24, %v270_v23 }
 0x12d   : > { %v296_v26 = vmax.f32 %v294_v25, 0.0 }
 0x12f   : > { %582 = vmatpush.msk.msra.mxu1 %vm338_vm1, %v296_v26  ;;  %598 = vmatpush.msk.msra.mxu2 %vm338_vm1, %v296_v26 }
 0x130   : > { %599 = vmatpush.msk.msra.mxu3 %vm338_vm1, %v296_v26  ;;  %583 = vmatmul.msk.f32.vlgmr.msra.gmra.mxu1 %vm325_vm2, %v297_v27 }
 0x131   : > { %586 = vmatmul.msk.f32.vlgmr.msra.gmra.mxu3 %vm325_vm2, %v300_v28  ;;  %584 = vmatmul.msk.f32.vlgmr.msra.gmra.mxu2 %vm325_vm2, %v298_v29 }
 0x139   : > { %585 = vmatmul.msk.f32.gmra.mxu2 %vm325_vm2, %v299_v30 }
 0x1ad   : > { %v359_v32 = vpop.f32.mrf.mxu1 }
 0x1ae   : > { %v360_v33 = vadd.f32 %v359_v32, %v308_v31 }
 0x1b0   : > { %v587_v34 = vmul.f32 -1.442695, %v360_v33 }
 0x1b2   : > { %654 = vpow2.f32 %v587_v34 }
 0x1b4   : > { %v368_v37 = vpop.f32.mrf.mxu3  ;;  %v362_v38 = vpop.f32.mrf.mxu2 }
 0x1b5   : > { %v369_v39 = vadd.f32 %v368_v37, %v323_v36  ;;  %v363_v40 = vadd.f32 %v362_v38, %v313_v35 }
 0x1b7   : > { %v590_v41 = vmul.f32 -1.442695, %v369_v39  ;;  %v588_v42 = vmul.f32 -1.442695, %v363_v40 }
 0x1b8   : > { %v655_v43 = vpop.eup %654 }
 0x1b9   : > { %v383_v44 = vadd.f32 1.0, %v655_v43  ;;  %656 = vpow2.f32 %v590_v41 }
 0x1ba   : > { %658 = vpow2.f32 %v588_v42 }
 0x1bb   : > { %660 = vrcp.f32 %v383_v44  ;;  %v398_v56 = vand.u32 2147483648, %v383_v44  ;;  %v396_v58 = vand.u32 2147483647, %v383_v44  ;;  %vm392_vm4 = vweird.f32 %v383_v44 }
 0x1bc   : > { %v365_v46 = vpop.f32.mrf.mxu2 }
 0x1bd   : > { %v366_v47 = vadd.f32 %v365_v46, %v318_v45  ;;  %v399_v3 = vor.u32 1.1754944e-38, %v398_v56  ;;  %vm397_vm6 = vcmp.eq.f32.partialorder %v396_v58, 8.507059e+37 }
 0x1bf   : > { %v657_v48 = vpop.eup %656  ;;  %v589_v49 = vmul.f32 -1.442695, %v366_v47 }
 0x1c0   : > { %v659_v50 = vpop.eup %658  ;;  %v386_v51 = vadd.f32 1.0, %v657_v48 }
 0x1c1   : > { %v661_v52 = vpop.eup %660  ;;  %v384_v53 = vadd.f32 1.0, %v659_v50  ;;  %662 = vpow2.f32 %v589_v49 }
 0x1c2   : > { %664 = vrcp.f32 %v386_v51  ;;  %v388_v54 = vmul.f32 %v661_v52, %v383_v44  ;;  %vm393_vm3 = vweird.f32 %v661_v52  ;;  %v443_v14 = vand.u32 2147483648, %v386_v51 }
 0x1c3   : > { %666 = vrcp.f32 %v384_v53  ;;  %vm394_vm5 = vmor %vm392_vm4, %vm393_vm3  ;;  %v413_v15 = vand.u32 2147483648, %v384_v53  ;;  %vm407_vm7 = vweird.f32 %v384_v53  ;;  %v411_v17 = vand.u32 2147483647, %v384_v53 }
 0x1c4   : > { %v389_v55 = vsub.f32 1.0, %v388_v54  ;;  %v441_v19 = vand.u32 2147483647, %v386_v51  ;;  %vm437_vm10 = vweird.f32 %v386_v51  ;;  %v444_v25 = vor.u32 1.1754944e-38, %v443_v14 }
 0x1c5   : > { %v414_v23 = vor.u32 1.1754944e-38, %v413_v15  ;;  %vm412_vm13 = vcmp.eq.f32.partialorder %v411_v17, 8.507059e+37 }
 0x1c6   : > { %v390_v57 = vmul.f32 %v661_v52, %v389_v55  ;;  %vm442_vm14 = vcmp.eq.f32.partialorder %v441_v19, 8.507059e+37 }
 0x1c7   : > { %v663_v59 = vpop.eup %662 }
 0x1c8   : > { %v665_v60 = vpop.eup %664  ;;  %v385_v61 = vadd.f32 1.0, %v663_v59  ;;  %v391_v62 = vadd.f32 %v661_v52, %v390_v57 }
 0x1c9   : > { %v667_v63 = vpop.eup %666  ;;  %v433_v5 = vmul.f32 %v665_v60, %v386_v51  ;;  %vm438_vm9 = vweird.f32 %v665_v60 }
 0x1ca   : > { %668 = vrcp.f32 %v385_v61  ;;  %v395_v10 = vsel %vm394_vm5, %v661_v52, %v391_v62  ;;  %v403_v11 = vmul.f32 %v667_v63, %v384_v53  ;;  %vm408_vm8 = vweird.f32 %v667_v63  ;;  %vm439_vm12 = vmor %vm437_vm10, %vm438_vm9 }
 0x1cb   : > { %v400_v12 = vsel %vm397_vm6, %v399_v3, %v395_v10  ;;  %v434_v13 = vsub.f32 1.0, %v433_v5  ;;  %vm953_vm11 = vmor %vm407_vm7, %vm408_vm8  ;;  %vm422_vm15 = vweird.f32 %v385_v61  ;;  %v428_v31 = vand.u32 2147483648, %v385_v61 }
 0x1cc   : > { %449 = vperm.xlu2 %651, %v400_v12   ;;  %v404_v16 = vsub.f32 1.0, %v403_v11  ;;  %v426_v34 = vand.u32 2147483647, %v385_v61 }
 0x1cd   : > { %v435_v18 = vmul.f32 %v665_v60, %v434_v13  ;;  %v429_v36 = vor.u32 1.1754944e-38, %v428_v31 }
 0x1ce   : > { %v405_v20 = vmul.f32 %v667_v63, %v404_v16  ;;  %vm427_vm2 = vcmp.eq.f32.partialorder %v426_v34, 8.507059e+37 }
 0x1cf   : > { %v436_v21 = vadd.f32 %v665_v60, %v435_v18 }
 0x1d0   : > { %v669_v24 = vpop.eup %668  ;;  %v406_v26 = vadd.f32 %v667_v63, %v405_v20 }
 0x1d1   : > { %v440_v27 = vsel %vm439_vm12, %v665_v60, %v436_v21  ;;  %v418_v28 = vmul.f32 %v669_v24, %v385_v61  ;;  %vm423_vm0 = vweird.f32 %v669_v24 }
 0x1d2   : > { %v445_v29 = vsel %vm442_vm14, %v444_v25, %v440_v27  ;;  %v410_v30 = vsel %vm953_vm11, %v667_v63, %v406_v26  ;;  %vm424_vm1 = vmor %vm422_vm15, %vm423_vm0 }
 0x1d3   : > { %464 = vperm.xlu1 %653, %v445_v29   ;;  %v415_v32 = vsel %vm412_vm13, %v414_v23, %v410_v30  ;;  %v419_v33 = vsub.f32 1.0, %v418_v28 }
 0x1d4   : > { %454 = vperm.xlu2 %651, %v415_v32  }
 0x1d5   : > { %v420_v35 = vmul.f32 %v669_v24, %v419_v33 }
 0x1d7   : > { %v421_v37 = vadd.f32 %v669_v24, %v420_v35 }
 0x1d9   : > { %v425_v38 = vsel %vm424_vm1, %v669_v24, %v421_v37 }
 0x1da   : > { %v430_v39 = vsel %vm427_vm2, %v429_v36, %v425_v38 }
 0x1dc   : > { %459 = vperm.xlu2 %651, %v430_v39  }
 0x226   : > { %v450_v40 = vpop.permute.xlu2 %449 }
 0x227   : > { %v467_v41 = vmul.f32 %v450_v40, %v915_v8  ;;  %v468_v42 = vmul.f32 %v450_v40, %v917_v9 }
 0x229   : > { %475 = vst [vmem:[%s244_s8] sm:$0xff] %v467_v41 }
 0x22a   : > { %476 = vst [vmem:[%s244_s8 + $0x8] sm:$0xff] %v468_v42 }
 0x22e   : > { %v455_v43 = vpop.permute.xlu2 %454 }
 0x22f   : > { %v469_v44 = vmul.f32 %v455_v43, %v903_v2  ;;  %v470_v45 = vmul.f32 %v455_v43, %v907_v4 }
 0x231   : > { %477 = vst [vmem:[%s244_s8 + $0x10] sm:$0xff] %v469_v44 }
 0x232   : > { %478 = vst [vmem:[%s244_s8 + $0x18] sm:$0xff] %v470_v45 }
 0x236   : > { %v460_v46 = vpop.permute.xlu2 %459 }
 0x237   : > { %v471_v47 = vmul.f32 %v460_v46, %v911_v6  ;;  %v472_v48 = vmul.f32 %v460_v46, %v913_v7 }
 0x239   : > { %479 = vst [vmem:[%s244_s8 + $0x20] sm:$0xff] %v471_v47 }
 0x23a   : > { %480 = vst [vmem:[%s244_s8 + $0x28] sm:$0xff] %v472_v48 }
 0x245   : > { %v465_v2 = vpop.permute.xlu1 %464 }
 0x246   : > { %v473_v4 = vmul.f32 %v465_v2, %v899_v0  ;;  %v474_v8 = vmul.f32 %v465_v2, %v901_v1 }
 0x248   : > { %481 = vst [vmem:[%s244_s8 + $0x30] sm:$0xff] %v473_v4 }
 0x249   : > { %482 = vst [vmem:[%s244_s8 + $0x38] sm:$0xff] %v474_v8 }
 0x24a   : > { %727 = shalt.err (!%p724_p4)
}
 0x24b   : > { %s771_s12 = smov 256   ;;  %s772_s26 = smov 16  }
 0x24c   : > { %602 = dma.vmem_to_hbm [thread:$0]  (%p853_p11), %s497_s7, 1024, %s499_s11, %s484_s23, %s771_s12, %s771_s12, %s772_s26  }
 0x24d PF: > { %s513_s8 = sand.u32 1, %s754_s18   ;;  %p1015_p7 = scmp.ge.s32.totalorder %s766_s21, 2 }
 0x24e   : > { %s514_s28 = scalar_lea.sflag [#allocation4], %s513_s8 }
 0x24f   : > { %p609_p5 = pnand %p1015_p7, %p857_p12 }
 0x251   : > { %p610_p8 = pneg %p609_p5 }
 0x253   : > { %749 = dma.done.wait (%p610_p8), %s514_s28, 1024  }
 0x254   : > { %751 = vsyncadd (%p610_p8), %s514_s28, 4294966272  ;;  %p18_p10 = scmp.ge.s32.totalorder %s828_s24, 4   ;;  %s1016_s18 = smov %s758_s19 }
 0x255   : > { %s1017_s19 = smov %s762_s20  ;;  %s1018_s20 = smov %s840_s27 }
 0x256   : > { %s1019_s21 = smov %s828_s24  ;;  %20 = sbr.rel (!%p18_p10) target bundleno = 5 (0x5), region = 85 }
 0x25b   :  { %520 = vsyncpa [#allocation3], 1 }
 0x25c   :  { %522 = vsyncpa [#allocation3 + $0x1], 1 }
 0x25d   :  { %523 = vsyncpa [#allocation4], 1 }
 0x25e   :  { %525 = vsyncpa [#allocation4 + $0x1], 1 }

</bundles_post_ra>
